<compile_context>
chip_gen: v6e
topology: v6e:2x2x1
jax: 0.10.0
libtpu: 0.0.40
codegen_flags: <defaults>
</compile_context>

<pallas_src>
import jax
import jax.numpy as jnp
from jax.experimental import pallas as pl
from jax.experimental.pallas import tpu as pltpu

SUBLANES = 8
_WIDTHS = (1024, 512, 256, 128)          # lane-dense candidate last dims
TARGET_BLOCK_BYTES = 4 * 1024 * 1024     # ~4 MiB block; 16 MiB with 2x(in+out) buffers
VMEM_LIMIT_BYTES = 32 * 1024 * 1024      # lift v5e's 16 MiB default; safe on v6e/v7x


def _round_up(a, b):
    return ((a + b - 1) // b) * b


def _inverse_gamma_kernel(params_ref, logx_ref, out_ref):
    # params = [coef, rate, const]  (f32 scalars in SMEM via scalar prefetch)
    coef = params_ref[0]
    rate = params_ref[1]
    const = params_ref[2]
    lx = logx_ref[...].astype(jnp.float32)
    out_ref[...] = (const + coef * lx - rate * jnp.exp(-lx)).astype(out_ref.dtype)


def _params_array(shape, rate):
    """Fold the distribution parameters into [coef, rate, const] (traceable)."""
    shape_f = jnp.asarray(shape, jnp.float32)
    rate_f = jnp.asarray(rate, jnp.float32)
    coef = -(shape_f + 1.0)                      # (shape-1)*(-lx) - 2*lx == -(shape+1)*lx
    const = shape_f * jnp.log(rate_f) - jax.scipy.special.gammaln(shape_f)
    return jnp.stack([coef, rate_f, const]).astype(jnp.float32)


def _jnp_elementwise(log_x, params, out_dtype):
    """Plain-jnp fallback for tiny ragged tails (< 128 elements)."""
    lx = log_x.astype(jnp.float32)
    return (params[2] + params[0] * lx - params[1] * jnp.exp(-lx)).astype(out_dtype)


def _run_pallas_slab(x2d, params, out_dtype):
    rows, w = x2d.shape
    itemsize = jnp.dtype(x2d.dtype).itemsize

    # Byte-targeted tile rows (multiple of 8) so f32/bf16 get the same DMA size.
    tr_cap = max(SUBLANES,
                 (TARGET_BLOCK_BYTES // (w * itemsize)) // SUBLANES * SUBLANES)
    if rows >= 4 * SUBLANES:
        # Keep >=4 grid steps: DMA/compute overlap + both v7x TCs engaged.
        tr = min(tr_cap, _round_up(pl.cdiv(rows, 4), SUBLANES))
        tr = min(tr, rows)
    else:
        tr = rows                                # single full-extent block
    grid = (pl.cdiv(rows, tr),)

    n = rows * w
    cost = pl.CostEstimate(flops=5 * n, transcendentals=n,
                           bytes_accessed=2 * n * itemsize)

    return pl.pallas_call(
        _inverse_gamma_kernel,
        out_shape=jax.ShapeDtypeStruct((rows, w), out_dtype),
        grid_spec=pltpu.PrefetchScalarGridSpec(
            num_scalar_prefetch=1,
            grid=grid,
            in_specs=[pl.BlockSpec((tr, w), lambda i, p: (i, 0))],
            out_specs=pl.BlockSpec((tr, w), lambda i, p: (i, 0)),
        ),
        compiler_params=pltpu.CompilerParams(
            dimension_semantics=("parallel",),
            vmem_limit_bytes=VMEM_LIMIT_BYTES,
        ),
        cost_estimate=cost,
    )(params, x2d)


def inverse_gamma_log_pdf(log_x, shape=0.001, rate=0.001):
    """log p(x) for x = 1/z, z ~ Gamma(shape, rate), evaluated at log_x."""
    orig_shape = log_x.shape
    out_dtype = log_x.dtype
    params = _params_array(shape, rate)

    x = log_x.reshape(-1)
    n = x.shape[0]
    if n == 0:
        return log_x

    # Zero-copy path: the largest lane-dense width dividing n -> pure reshape,
    # no pad, no slice, no concat (1R + 1W of HBM total).
    for w in _WIDTHS:
        if n % w == 0:
            out2d = _run_pallas_slab(x.reshape(n // w, w), params, out_dtype)
            return out2d.reshape(orig_shape)

    # Ragged size (n not a multiple of 128, uncommon): Pallas on the leading
    # 128-aligned slab, <128-element tail in plain jnp.
    n_main = (n // 128) * 128
    if n_main == 0:
        return _jnp_elementwise(x, params, out_dtype).reshape(orig_shape)
    w = next(wd for wd in _WIDTHS if n_main % wd == 0)
    main = _run_pallas_slab(x[:n_main].reshape(n_main // w, w), params, out_dtype)
    tail = _jnp_elementwise(x[n_main:], params, out_dtype)
    return jnp.concatenate([main.reshape(-1), tail]).reshape(orig_shape)


def _reference(log_x, shape=0.001, rate=0.001):
    shape = jnp.float32(shape)
    rate = jnp.float32(rate)
    neg = -log_x.astype(jnp.float32)
    gamma_lp = (
        shape * jnp.log(rate)
        + (shape - 1.0) * neg
        - rate * jnp.exp(neg)
        - jax.scipy.special.gammaln(shape)
    )
    return (gamma_lp - 2.0 * log_x.astype(jnp.float32)).astype(log_x.dtype)


if __name__ == "__main__":
    key = jax.random.PRNGKey(0)

    # NCHW-shaped log_x input (batch=2, channels=4, spatial=16x16) -> clean path
    log_x = jax.random.normal(key, (2, 4, 16, 16), dtype=jnp.float32)
    out = inverse_gamma_log_pdf(log_x, shape=0.001, rate=0.001)
    out = jax.block_until_ready(out)
    ref = _reference(log_x, shape=0.001, rate=0.001)
    assert out.shape == log_x.shape and out.dtype == log_x.dtype
    assert jnp.allclose(out, ref, rtol=1e-5, atol=1e-5), "mismatch vs reference"

    # Ragged-size input exercising the leading-slab + jnp-tail path.
    key2 = jax.random.split(key)[0]
    log_x2 = jax.random.normal(key2, (2, 3, 17, 19), dtype=jnp.float32)
    out2 = jax.block_until_ready(inverse_gamma_log_pdf(log_x2, 0.001, 0.001))
    ref2 = _reference(log_x2, 0.001, 0.001)
    assert out2.shape == log_x2.shape and out2.dtype == log_x2.dtype
    assert jnp.allclose(out2, ref2, rtol=1e-5, atol=1e-5), "mismatch (ragged)"

    print("KERNEL_OK")
</pallas_src>

<mosaic_0001>
module attributes {stable_mosaic.version = 11 : i64} {
  func.func @_inverse_gamma_kernel(%arg0: i32, %arg1: memref<3xf32, #tpu.memory_space<smem>>, %arg2: memref<2x1024xf32, #tpu.memory_space<vmem>>, %arg3: memref<2x1024xf32, #tpu.memory_space<vmem>>) attributes {dimension_semantics = [#tpu.dimension_semantics<parallel>], iteration_bounds = array<i64: 1>, scalar_prefetch = 1 : i64, scratch_operands = 0 : i64, tpu.core_type = #tpu.core_type<tc>, window_params = [{transform_indices = @transform_0, window_bounds = array<i64: 2, 1024>}, {transform_indices = @transform_1, window_bounds = array<i64: 2, 1024>}]} {
    %c0 = arith.constant 0 : index
    %0 = memref.load %arg1[%c0] : memref<3xf32, #tpu.memory_space<smem>>
    %c1 = arith.constant 1 : index
    %1 = memref.load %arg1[%c1] : memref<3xf32, #tpu.memory_space<smem>>
    %c2 = arith.constant 2 : index
    %2 = memref.load %arg1[%c2] : memref<3xf32, #tpu.memory_space<smem>>
    %c0_0 = arith.constant 0 : index
    %c0_1 = arith.constant 0 : index
    %3 = vector.load %arg2[%c0_0, %c0_1] : memref<2x1024xf32, #tpu.memory_space<vmem>>, vector<2x1024xf32>
    %4 = vector.broadcast %0 : f32 to vector<2x1024xf32>
    %5 = arith.mulf %4, %3 : vector<2x1024xf32>
    %6 = vector.broadcast %2 : f32 to vector<2x1024xf32>
    %7 = arith.addf %6, %5 : vector<2x1024xf32>
    %cst = arith.constant 0.000000e+00 : f32
    %8 = vector.broadcast %cst : f32 to vector<2x1024xf32>
    %9 = arith.subf %8, %3 : vector<2x1024xf32>
    %10 = math.exp %9 : vector<2x1024xf32>
    %11 = vector.broadcast %1 : f32 to vector<2x1024xf32>
    %12 = arith.mulf %11, %10 : vector<2x1024xf32>
    %13 = arith.subf %7, %12 : vector<2x1024xf32>
    %c0_2 = arith.constant 0 : index
    %c0_3 = arith.constant 0 : index
    %14 = vector.load %arg3[%c0_2, %c0_3] : memref<2x1024xf32, #tpu.memory_space<vmem>>, vector<2x1024xf32>
    tpu.vector_store %arg3[%c0_2, %c0_3], %13 {strides = array<i32>} : memref<2x1024xf32, #tpu.memory_space<vmem>>, vector<2x1024xf32>,
    return
  }
  func.func @transform_0(%arg0: i32, %arg1: memref<3xf32, #tpu.memory_space<smem>>) -> (i32, i32) {
    %c0_i32 = arith.constant 0 : i32
    %c0_i32_0 = arith.constant 0 : i32
    return %arg0, %c0_i32 : i32, i32
  }
  func.func @transform_1(%arg0: i32, %arg1: memref<3xf32, #tpu.memory_space<smem>>) -> (i32, i32) {
    %c0_i32 = arith.constant 0 : i32
    %c0_i32_0 = arith.constant 0 : i32
    return %arg0, %c0_i32 : i32, i32
  }
}

</mosaic_0001>

<bundles_post_ra>
// kernel: tpu_custom_call.1
= control target key start
LH: loop header
LB: loop body
LE: loop exit
PB: predicated region body
PF: predicated region fallthrough
CT: control target
= control target key end

     0   :  { %s128_s9 = smov [#allocation3]   ;;  %s155_s0 = inlined_call_operand.hbm [shape: f32[3], index: 0, kind: input, shape index: {}]   ;;  %s156_s1 = inlined_call_operand.hbm [shape: f32[2,1024], index: 1, kind: input, shape index: {}]   ;;  %s157_s2 = inlined_call_operand.hbm [shape: f32[2,1024], index: 2, kind: output, shape index: {}]  }
   0x1   :  { %8 = dma.hbm_to_smem %s155_s0, 16, %s128_s9, [#allocation2] }
   0x2   :  { %122 = dma.done.wait [#allocation2], 16 }
   0x3   :  { %123 = vsyncadd [#allocation2], 4294967280 }
   0x4   :  { %10 = sfence }
   0x5   :  { %11 = vsyncpa [#allocation5], 0 }
   0x6   :  { %12 = vsyncpa [#allocation6], 0  ;;  %s129_s12 = smov [#allocation4]  }
   0x7   :  { %s19_s13 = sshll.u32 %s129_s12, 4  ;;  %s20_s13 = int_to_ptr.vmem [resolvable:$true] %s19_s13 }
   0x8   :  { %s90_s14 = scalar_lea.vmem %s20_s13, 256  ;;  %p95_p1 = scmp.lt.s32.totalorder %s20_s13, %s20_s13 }
   0x9   :  { %p91_p0 = scmp.ne.s32.totalorder %s20_s13, %s90_s14  ;;  %p96_p2 = scmp.lt.s32.totalorder %s90_s14, %s90_s14 }
   0xb   :  { %p97_p3 = por %p96_p2, %p95_p1 }
   0xd   :  { %p98_p4 = pnand %p97_p3, %p91_p0 }
   0xf   :  { %101 = shalt.err (!%p98_p4)
}
  0x10   :  { %22 = dma.hbm_to_vmem [thread:$0]  %s156_s1, 256, %s20_s13, [#allocation5]  }
  0x11   :  { %124 = dma.done.wait [#allocation5], 256  }
  0x12   :  { %125 = vsyncadd [#allocation5], 4294967040  ;;  %v29_v0 = vld [vmem:[#allocation4] sm:$0xff]  ;;  %v30_v1 = vld [vmem:[#allocation4 + $0x8] sm:$0xff]  ;;  %s26_s0 = sld [smem:[#allocation3]]  ;;  %s130_s1 = smov [#allocation7]  }
  0x13   :  { %v37_v2 = vsub.f32 0.0, %v29_v0  ;;  %v38_v3 = vsub.f32 0.0, %v30_v1  ;;  %s66_s17 = sld [smem:[#allocation3 + $0x2]]  ;;  %s56_s19 = sshll.u32 %s130_s1, 4  ;;  %s57_s19 = int_to_ptr.vmem [resolvable:$true] %s56_s19 }
  0x14   :  { %s65_s18 = sld [smem:[#allocation3 + $0x1]]  ;;  %s102_s20 = scalar_lea.vmem %s57_s19, 256 }
  0x15   :  { %v39_v4 = vmul.f32 1.442695, %v37_v2  ;;  %v41_v5 = vmul.f32 1.442695, %v38_v3  ;;  %p103_p5 = scmp.ne.s32.totalorder %s57_s19, %s102_s20  ;;  %p107_p6 = scmp.lt.s32.totalorder %s57_s19, %s57_s19 }
  0x16   :  { %p108_p7 = scmp.lt.s32.totalorder %s102_s20, %s102_s20 }
  0x17   :  { %70 = vpow2.f32 %v39_v4 }
  0x18   :  { %72 = vpow2.f32 %v41_v5  ;;  %v31_v6 = vstv %s26_s0  ;;  %p109_p8 = por %p108_p7, %p107_p6 }
  0x19   :  { %v32_v7 = vmul.f32 %v31_v6, %v29_v0  ;;  %v34_v8 = vstv %s66_s17  ;;  %v33_v9 = vmul.f32 %v31_v6, %v30_v1 }
  0x1a   :  { %v43_v10 = vstv %s65_s18  ;;  %p110_p9 = pnand %p109_p8, %p103_p5 }
  0x1b   :  { %v35_v11 = vadd.f32 %v34_v8, %v32_v7  ;;  %v36_v13 = vadd.f32 %v34_v8, %v33_v9 }
  0x24   :  { %v71_v12 = vpop.eup %70 }
  0x25   :  { %v73_v14 = vpop.eup %72  ;;  %v44_v15 = vmul.f32 %v71_v12, %v43_v10 }
  0x26   :  { %v45_v16 = vmul.f32 %v73_v14, %v43_v10 }
  0x27   :  { %v46_v17 = vsub.f32 %v35_v11, %v44_v15 }
  0x28   :  { %v47_v18 = vsub.f32 %v36_v13, %v45_v16 }
  0x29   :  { %48 = vst [vmem:[#allocation7] sm:$0xff] %v46_v17 }
  0x2a   :  { %49 = vst [vmem:[#allocation7 + $0x8] sm:$0xff] %v47_v18 }
  0x2b   :  { %113 = shalt.err (!%p110_p9)
}
  0x2c   :  { %59 = dma.vmem_to_hbm [thread:$0]  %s57_s19, 256, %s157_s2, [#allocation6]  }
  0x2d   :  { %126 = dma.done.wait [#allocation6], 256  }
  0x2e   :  { %127 = vsyncadd [#allocation6], 4294967040 }
  0x2f   :  { %63 = vsyncpa [#allocation5], 1 }
  0x30   :  { %64 = vsyncpa [#allocation6], 1 }

</bundles_post_ra>
